<compile_context>
chip_gen: v6e
topology: v6e:2x2x1
jax: 0.10.0
libtpu: 0.0.40
codegen_flags: <defaults>
</compile_context>

<pallas_src>
import jax
import jax.numpy as jnp
from jax.experimental import pallas as pl
from jax.experimental.pallas import tpu as pltpu


def add_conv1x1_kernel(a_ref, b_ref, w2_ref, o_ref, x_sc):
    # a_ref, b_ref: (C_in, HW); w2_ref: (C_out, 2*C_in); o_ref: (C_out, HW)
    # x_sc: (2*C_in, HW) VMEM scratch holding [a; b] stacked along channels.
    c_in = a_ref.shape[0]
    x_sc[:c_in, :] = a_ref[...]
    x_sc[c_in:, :] = b_ref[...]
    # Single K=128 MXU matmul: [W | W] @ [a; b] == W @ (a + b).
    o_ref[...] = jnp.dot(
        w2_ref[...], x_sc[...], preferred_element_type=jnp.float32
    )


def add_conv1x1(x68, x76, weight):
    """x68, x76: NCHW float32 [1, C_in, H, W]; weight: [C_out, C_in, 1, 1]."""
    N, C_in, H, W = x68.shape
    C_out = weight.shape[0]
    assert N == 1, "channel-major zero-copy path assumes N == 1 (module spec)"
    HW = H * W

    # Pure reshapes -- zero data movement, no transposes anywhere.
    a = x68.reshape(C_in, HW)                       # (64, 196)
    b = x76.reshape(C_in, HW)                       # (64, 196)
    w = weight.reshape(C_out, C_in)                 # (384, 64)
    # Duplicate the weight along K once so the add folds into the matmul.
    w2 = jnp.concatenate([w, w], axis=1)            # (384, 128)

    flops = 2 * C_out * (2 * C_in) * HW
    bytes_accessed = 4 * (2 * C_in * HW + C_out * 2 * C_in + C_out * HW)

    out = pl.pallas_call(
        add_conv1x1_kernel,
        out_shape=jax.ShapeDtypeStruct((C_out, HW), jnp.float32),
        in_specs=[
            pl.BlockSpec(memory_space=pltpu.MemorySpace.VMEM),
            pl.BlockSpec(memory_space=pltpu.MemorySpace.VMEM),
            pl.BlockSpec(memory_space=pltpu.MemorySpace.VMEM),
        ],
        out_specs=pl.BlockSpec(memory_space=pltpu.MemorySpace.VMEM),
        scratch_shapes=[pltpu.VMEM((2 * C_in, HW), jnp.float32)],
        cost_estimate=pl.CostEstimate(
            flops=flops, transcendentals=0, bytes_accessed=bytes_accessed
        ),
    )(a, b, w2)

    # (C_out, H*W) is exactly NCHW for N=1.
    return out.reshape(1, C_out, H, W)


if __name__ == "__main__":
    key = jax.random.PRNGKey(0)
    k1, k2, k3 = jax.random.split(key, 3)

    N, C_in, H, W = 1, 64, 14, 14
    C_out = 384

    x68 = jax.random.normal(k1, (N, C_in, H, W), dtype=jnp.float32)
    x76 = jax.random.normal(k2, (N, C_in, H, W), dtype=jnp.float32)
    # Deterministic stand-in for Conv2d(64, 384, 1, 1, bias=False) weights.
    weight = jax.random.normal(k3, (C_out, C_in, 1, 1), dtype=jnp.float32) * 0.05

    out = add_conv1x1(x68, x76, weight)
    jax.block_until_ready(out)

    # Reference: (x68 + x76) convolved with the 1x1 kernel.
    xsum = x68 + x76
    ref = jnp.einsum("nchw,oc->nohw", xsum, weight.reshape(C_out, C_in))
    assert out.shape == (N, C_out, H, W)
    assert jnp.allclose(out, ref, atol=1e-3, rtol=1e-3)

    print("KERNEL_OK")
</pallas_src>

<mosaic_0001>
module attributes {stable_mosaic.version = 11 : i64} {
  func.func @add_conv1x1_kernel(%arg0: memref<64x196xf32, #tpu.memory_space<vmem>>, %arg1: memref<64x196xf32, #tpu.memory_space<vmem>>, %arg2: memref<384x128xf32, #tpu.memory_space<vmem>>, %arg3: memref<384x196xf32, #tpu.memory_space<vmem>>, %arg4: memref<128x196xf32, #tpu.memory_space<vmem>>) attributes {dimension_semantics = [], scalar_prefetch = 0 : i64, scratch_operands = 1 : i64, tpu.core_type = #tpu.core_type<tc>} {
    %c0 = arith.constant 0 : index
    %c0_0 = arith.constant 0 : index
    %0 = vector.load %arg0[%c0, %c0_0] : memref<64x196xf32, #tpu.memory_space<vmem>>, vector<64x196xf32>
    %c0_1 = arith.constant 0 : index
    %c0_2 = arith.constant 0 : index
    %1 = vector.load %arg4[%c0_1, %c0_2] : memref<128x196xf32, #tpu.memory_space<vmem>>, vector<64x196xf32>
    tpu.vector_store %arg4[%c0_1, %c0_2], %0 {strides = array<i32>} : memref<128x196xf32, #tpu.memory_space<vmem>>, vector<64x196xf32>,
    %c0_3 = arith.constant 0 : index
    %c0_4 = arith.constant 0 : index
    %2 = vector.load %arg1[%c0_3, %c0_4] : memref<64x196xf32, #tpu.memory_space<vmem>>, vector<64x196xf32>
    %c64 = arith.constant 64 : index
    %c0_5 = arith.constant 0 : index
    %3 = vector.load %arg4[%c64, %c0_5] : memref<128x196xf32, #tpu.memory_space<vmem>>, vector<64x196xf32>
    tpu.vector_store %arg4[%c64, %c0_5], %2 {strides = array<i32>} : memref<128x196xf32, #tpu.memory_space<vmem>>, vector<64x196xf32>,
    %c0_6 = arith.constant 0 : index
    %c0_7 = arith.constant 0 : index
    %4 = vector.load %arg2[%c0_6, %c0_7] : memref<384x128xf32, #tpu.memory_space<vmem>>, vector<384x128xf32>
    %c0_8 = arith.constant 0 : index
    %c0_9 = arith.constant 0 : index
    %5 = vector.load %arg4[%c0_8, %c0_9] : memref<128x196xf32, #tpu.memory_space<vmem>>, vector<128x196xf32>
    %cst = arith.constant dense<0.000000e+00> : vector<384x196xf32>
    %6 = tpu.matmul %4, %5, %cst {dimension_numbers = #tpu.dot_dimension_numbers<[1], [0], [0], [1], [0, 0, 1, 1], [], []>} : vector<384x128xf32>, vector<128x196xf32>, vector<384x196xf32> -> vector<384x196xf32>
    %c0_10 = arith.constant 0 : index
    %c0_11 = arith.constant 0 : index
    %7 = vector.load %arg3[%c0_10, %c0_11] : memref<384x196xf32, #tpu.memory_space<vmem>>, vector<384x196xf32>
    tpu.vector_store %arg3[%c0_10, %c0_11], %6 {strides = array<i32>} : memref<384x196xf32, #tpu.memory_space<vmem>>, vector<384x196xf32>,
    return
  }
}

</mosaic_0001>

<bundles_post_ra>
// kernel: tpu_custom_call.1
= control target key start
LH: loop header
LB: loop body
LE: loop exit
PB: predicated region body
PF: predicated region fallthrough
CT: control target
= control target key end

     0   :  { %8 = vsyncpa [#allocation4], 0  ;;  %s1236_s0 = inlined_call_operand.hbm [shape: f32[64,196], index: 0, kind: input, shape index: {}]   ;;  %s1237_s1 = inlined_call_operand.hbm [shape: f32[64,196], index: 1, kind: input, shape index: {}]   ;;  %s1238_s2 = inlined_call_operand.hbm [shape: f32[384,128], index: 2, kind: input, shape index: {}]   ;;  %s1239_s3 = inlined_call_operand.vmem [shape: f32[384,196], index: 3, kind: output, shape index: {}]  }
   0x1   :  { %9 = vsyncpa [#allocation6], 0  ;;  %s759_s12 = smov [#allocation5]   ;;  %s760_s14 = smov [#allocation3]  }
   0x2   :  { %s27_s13 = sshll.u32 %s759_s12, 4  ;;  %s15_s15 = sshll.u32 %s760_s14, 4  ;;  %s28_s13 = int_to_ptr.vmem [resolvable:$true] %s27_s13  ;;  %s16_s15 = int_to_ptr.vmem [resolvable:$true] %s15_s15 }
   0x3   :  { %s703_s16 = scalar_lea.vmem %s28_s13, 2048  ;;  %p708_p1 = scmp.lt.s32.totalorder %s28_s13, %s28_s13 }
   0x4   :  { %p704_p0 = scmp.ne.s32.totalorder %s28_s13, %s703_s16  ;;  %p709_p2 = scmp.lt.s32.totalorder %s703_s16, %s703_s16 }
   0x6   :  { %p710_p3 = por %p709_p2, %p708_p1 }
   0x8   :  { %p711_p4 = pnand %p710_p3, %p704_p0 }
   0xa   :  { %714 = shalt.err (!%p711_p4)
}
   0xb   :  { %s761_s17 = smov 256   ;;  %s762_s18 = smov 16  }
   0xc   :  { %33 = dma.hbm_to_vmem [thread:$0]  %s1237_s1, 2048, %s28_s13, [#allocation6], %s761_s17, %s761_s17, %s762_s18  }
   0xd   :  { %s723_s21 = scalar_lea.vmem %s16_s15, 2048  ;;  %p728_p6 = scmp.lt.s32.totalorder %s16_s15, %s16_s15 }
   0xe   :  { %p724_p5 = scmp.ne.s32.totalorder %s16_s15, %s723_s21  ;;  %p729_p7 = scmp.lt.s32.totalorder %s723_s21, %s723_s21 }
  0x10   :  { %p730_p8 = por %p729_p7, %p728_p6 }
  0x12   :  { %p731_p9 = pnand %p730_p8, %p724_p5 }
  0x14   :  { %734 = shalt.err (!%p731_p9)
}
  0x15   :  { %21 = dma.hbm_to_vmem [thread:$0]  %s1236_s0, 2048, %s16_s15, [#allocation4], %s761_s17, %s761_s17, %s762_s18  }
  0x16   :  { %s763_s24 = smov [#allocation7]  }
  0x17   :  { %s39_s25 = sshll.u32 %s763_s24, 4  ;;  %s40_s25 = int_to_ptr.vmem [resolvable:$true] %s39_s25 }
  0x18   :  { %s743_s26 = scalar_lea.vmem %s40_s25, 6144  ;;  %p748_p11 = scmp.lt.s32.totalorder %s40_s25, %s40_s25 }
  0x19   :  { %p744_p10 = scmp.ne.s32.totalorder %s40_s25, %s743_s26  ;;  %p749_p12 = scmp.lt.s32.totalorder %s743_s26, %s743_s26 }
  0x1b   :  { %p750_p13 = por %p749_p12, %p748_p11 }
  0x1d   :  { %p751_p0 = pnand %p750_p13, %p744_p10 }
  0x1f   :  { %754 = shalt.err (!%p751_p0)
}
  0x20   :  { %s764_s1 = smov 128   ;;  %s765_s27 = smov 8  }
  0x21   :  { %45 = dma.hbm_to_vmem [thread:$0]  %s1238_s2, 6144, %s40_s25, [#allocation6], %s764_s1, %s764_s1, %s765_s27  }
  0x22   :  { %755 = dma.done.wait [#allocation4], 2048  }
  0x23   :  { %756 = vsyncadd [#allocation4], 4294965248 }
  0x24   :  { %757 = dma.done.wait [#allocation6], 8192  }
  0x25   :  { %758 = vsyncadd [#allocation6], 4294959104  ;;  %v766_v0 = vmov 0.0   ;;  %vm72_vm0 = vcmask 556032   ;;  %v103_v1 = vld [vmem:[#allocation5 + $0x78] sm:$0xff]  ;;  %v102_v2 = vld [vmem:[#allocation5 + $0x70] sm:$0xff] }
  0x26   :  { %264 = vmatprep.mubr.f32.mxu0 %v766_v0  ;;  %408 = vmatprep.mubr.f32.mxu1 %v766_v0  ;;  %v101_v3 = vld [vmem:[#allocation5 + $0x68] sm:$0xff]  ;;  %119 = vst.msk [vmem:[#allocation2 + $0xf8] sm:$0xff] %vm72_vm0, %v103_v1  ;;  %v100_v4 = vld [vmem:[#allocation5 + $0x60] sm:$0xff]  ;;  %v99_v5 = vld [vmem:[#allocation5 + $0x58] sm:$0xff] }
  0x27   :  { %117 = vst.msk [vmem:[#allocation2 + $0xe8] sm:$0xff] %vm72_vm0, %v101_v3  ;;  %v98_v6 = vld [vmem:[#allocation5 + $0x50] sm:$0xff]  ;;  %115 = vst.msk [vmem:[#allocation2 + $0xd8] sm:$0xff] %vm72_vm0, %v99_v5  ;;  %v97_v7 = vld [vmem:[#allocation5 + $0x48] sm:$0xff] }
  0x28   :  { %v96_v8 = vld [vmem:[#allocation5 + $0x40] sm:$0xff]  ;;  %v95_v9 = vld [vmem:[#allocation5 + $0x38] sm:$0xff]  ;;  %113 = vst.msk [vmem:[#allocation2 + $0xc8] sm:$0xff] %vm72_vm0, %v97_v7  ;;  %v94_v10 = vld [vmem:[#allocation5 + $0x30] sm:$0xff] }
  0x29   :  { %111 = vst.msk [vmem:[#allocation2 + $0xb8] sm:$0xff] %vm72_vm0, %v95_v9  ;;  %v93_v11 = vld [vmem:[#allocation5 + $0x28] sm:$0xff]  ;;  %v92_v12 = vld [vmem:[#allocation5 + $0x20] sm:$0xff]  ;;  %v91_v13 = vld [vmem:[#allocation5 + $0x18] sm:$0xff] }
  0x2a   :  { %109 = vst.msk [vmem:[#allocation2 + $0xa8] sm:$0xff] %vm72_vm0, %v93_v11  ;;  %v804_v14 = vld [vmem:[#allocation5 + $0x10] sm:$0xff]  ;;  %v89_v15 = vld [vmem:[#allocation5 + $0x8] sm:$0xff]  ;;  %107 = vst.msk [vmem:[#allocation2 + $0x98] sm:$0xff] %vm72_vm0, %v91_v13 }
  0x2b   :  { %105 = vst.msk [vmem:[#allocation2 + $0x88] sm:$0xff] %vm72_vm0, %v89_v15  ;;  %v808_v16 = vld [vmem:[#allocation5] sm:$0xff]  ;;  %v70_v17 = vld [vmem:[#allocation3 + $0x78] sm:$0xff]  ;;  %v810_v18 = vld [vmem:[#allocation3 + $0x70] sm:$0xff] }
  0x2c   :  { %87 = vst.msk [vmem:[#allocation2 + $0x78] sm:$0xff] %vm72_vm0, %v70_v17  ;;  %v68_v19 = vld [vmem:[#allocation3 + $0x68] sm:$0xff]  ;;  %v813_v20 = vld [vmem:[#allocation3 + $0x60] sm:$0xff]  ;;  %v66_v21 = vld [vmem:[#allocation3 + $0x58] sm:$0xff] }
  0x2d   :  { %85 = vst.msk [vmem:[#allocation2 + $0x68] sm:$0xff] %vm72_vm0, %v68_v19  ;;  %83 = vst.msk [vmem:[#allocation2 + $0x58] sm:$0xff] %vm72_vm0, %v66_v21  ;;  %v817_v22 = vld [vmem:[#allocation3 + $0x50] sm:$0xff]  ;;  %v64_v23 = vld [vmem:[#allocation3 + $0x48] sm:$0xff] }
  0x2e   :  { %v819_v24 = vld [vmem:[#allocation3 + $0x40] sm:$0xff]  ;;  %v199_v25 = vld [vmem:[#allocation2 + $0xf8] sm:$0xff]  ;;  %v197_v26 = vld [vmem:[#allocation2 + $0xe8] sm:$0xff]  ;;  %81 = vst.msk [vmem:[#allocation2 + $0x48] sm:$0xff] %vm72_vm0, %v64_v23 }
  0x2f   :  { %v62_v27 = vld [vmem:[#allocation3 + $0x38] sm:$0xff]  ;;  %200 = vmatprep.subr.mxu0 %v199_v25  ;;  %655 = vmatprep.subr.mxu1 %v199_v25  ;;  %v823_v28 = vld [vmem:[#allocation3 + $0x30] sm:$0xff]  ;;  %v60_v29 = vld [vmem:[#allocation3 + $0x28] sm:$0xff] }
  0x30   :  { %79 = vst.msk [vmem:[#allocation2 + $0x38] sm:$0xff] %vm72_vm0, %v62_v27  ;;  %201 = vmatpush1.msra.mxu0 %v102_v2  ;;  %671 = vmatpush1.msra.mxu1 %v102_v2  ;;  %v195_v30 = vld [vmem:[#allocation2 + $0xd8] sm:$0xff]  ;;  %77 = vst.msk [vmem:[#allocation2 + $0x28] sm:$0xff] %vm72_vm0, %v60_v29  ;;  %v826_v31 = vld [vmem:[#allocation3 + $0x20] sm:$0xff] }
  0x31   :  { %202 = vmatprep.subr.mxu0 %v197_v26  ;;  %656 = vmatprep.subr.mxu1 %v197_v26  ;;  %v58_v32 = vld [vmem:[#allocation3 + $0x18] sm:$0xff]  ;;  %v828_v33 = vld [vmem:[#allocation3 + $0x10] sm:$0xff]  ;;  %v193_v34 = vld [vmem:[#allocation2 + $0xc8] sm:$0xff] }
  0x32   :  { %203 = vmatpush1.msra.mxu0 %v100_v4  ;;  %672 = vmatpush1.msra.mxu1 %v100_v4  ;;  %75 = vst.msk [vmem:[#allocation2 + $0x18] sm:$0xff] %vm72_vm0, %v58_v32  ;;  %v56_v35 = vld [vmem:[#allocation3 + $0x8] sm:$0xff]  ;;  %v832_v36 = vld [vmem:[#allocation3] sm:$0xff]  ;;  %v191_v37 = vld [vmem:[#allocation2 + $0xb8] sm:$0xff] }
  0x33   :  { %204 = vmatprep.subr.mxu0 %v195_v30  ;;  %657 = vmatprep.subr.mxu1 %v195_v30  ;;  %73 = vst.msk [vmem:[#allocation2 + $0x8] sm:$0xff] %vm72_vm0, %v56_v35  ;;  %v189_v38 = vld [vmem:[#allocation2 + $0xa8] sm:$0xff]  ;;  %v187_v39 = vld [vmem:[#allocation2 + $0x98] sm:$0xff]  ;;  %v120_v49 = vld [vmem:[#allocation7] sm:$0xff] }
  0x34   :  { %205 = vmatpush1.msra.mxu0 %v98_v6  ;;  %673 = vmatpush1.msra.mxu1 %v98_v6  ;;  %v185_v40 = vld [vmem:[#allocation2 + $0x88] sm:$0xff]  ;;  %v183_v41 = vld [vmem:[#allocation2 + $0x78] sm:$0xff]  ;;  %v144_v50 = vld [vmem:[#allocation7 + $0xc0] sm:$0xff] }
  0x35   :  { %206 = vmatprep.subr.mxu0 %v193_v34  ;;  %658 = vmatprep.subr.mxu1 %v193_v34  ;;  %v181_v42 = vld [vmem:[#allocation2 + $0x68] sm:$0xff]  ;;  %v179_v43 = vld [vmem:[#allocation2 + $0x58] sm:$0xff]  ;;  %v122_v53 = vld [vmem:[#allocation7 + $0x10] sm:$0xff] }
  0x36   :  { %207 = vmatpush1.msra.mxu0 %v96_v8  ;;  %674 = vmatpush1.msra.mxu1 %v96_v8  ;;  %v177_v44 = vld [vmem:[#allocation2 + $0x48] sm:$0xff]  ;;  %v146_v54 = vld [vmem:[#allocation7 + $0xd0] sm:$0xff]  ;;  %v123_v55 = vld [vmem:[#allocation7 + $0x18] sm:$0xff] }
  0x37   :  { %208 = vmatprep.subr.mxu0 %v191_v37  ;;  %659 = vmatprep.subr.mxu1 %v191_v37  ;;  %v175_v45 = vld [vmem:[#allocation2 + $0x38] sm:$0xff]  ;;  %v173_v46 = vld [vmem:[#allocation2 + $0x28] sm:$0xff]  ;;  %v124_v57 = vld [vmem:[#allocation7 + $0x20] sm:$0xff] }
  0x38   :  { %209 = vmatpush1.msra.mxu0 %v94_v10  ;;  %675 = vmatpush1.msra.mxu1 %v94_v10  ;;  %v121_v51 = vld [vmem:[#allocation7 + $0x8] sm:$0xff]  ;;  %v147_v56 = vld [vmem:[#allocation7 + $0xd8] sm:$0xff]  ;;  %v148_v58 = vld [vmem:[#allocation7 + $0xe0] sm:$0xff] }
  0x39   :  { %210 = vmatprep.subr.mxu0 %v189_v38  ;;  %660 = vmatprep.subr.mxu1 %v189_v38  ;;  %v171_v47 = vld [vmem:[#allocation2 + $0x18] sm:$0xff]  ;;  %v145_v52 = vld [vmem:[#allocation7 + $0xc8] sm:$0xff]  ;;  %v126_v61 = vld [vmem:[#allocation7 + $0x30] sm:$0xff] }
  0x3a   :  { %211 = vmatpush1.msra.mxu0 %v92_v12  ;;  %676 = vmatpush1.msra.mxu1 %v92_v12  ;;  %v169_v48 = vld [vmem:[#allocation2 + $0x8] sm:$0xff]  ;;  %v150_v62 = vld [vmem:[#allocation7 + $0xf0] sm:$0xff]  ;;  %v127_v63 = vld [vmem:[#allocation7 + $0x38] sm:$0xff] }
  0x3b   :  { %212 = vmatprep.subr.mxu0 %v187_v39  ;;  %661 = vmatprep.subr.mxu1 %v187_v39  ;;  %v125_v59 = vld [vmem:[#allocation7 + $0x28] sm:$0xff]  ;;  %v151_v1 = vld [vmem:[#allocation7 + $0xf8] sm:$0xff]  ;;  %v128_v2 = vld [vmem:[#allocation7 + $0x40] sm:$0xff] }
  0x3c   :  { %213 = vmatpush1.msra.mxu0 %v804_v14  ;;  %677 = vmatpush1.msra.mxu1 %v804_v14  ;;  %v149_v60 = vld [vmem:[#allocation7 + $0xe8] sm:$0xff]  ;;  %v152_v3 = vld [vmem:[#allocation7 + $0x100] sm:$0xff]  ;;  %v130_v6 = vld [vmem:[#allocation7 + $0x50] sm:$0xff] }
  0x3d   :  { %214 = vmatprep.subr.mxu0 %v185_v40  ;;  %662 = vmatprep.subr.mxu1 %v185_v40  ;;  %v129_v4 = vld [vmem:[#allocation7 + $0x48] sm:$0xff]  ;;  %v154_v7 = vld [vmem:[#allocation7 + $0x110] sm:$0xff]  ;;  %v131_v8 = vld [vmem:[#allocation7 + $0x58] sm:$0xff] }
  0x3e   :  { %215 = vmatpush1.msra.mxu0 %v808_v16  ;;  %678 = vmatpush1.msra.mxu1 %v808_v16  ;;  %v153_v5 = vld [vmem:[#allocation7 + $0x108] sm:$0xff]  ;;  %v155_v9 = vld [vmem:[#allocation7 + $0x118] sm:$0xff]  ;;  %v132_v10 = vld [vmem:[#allocation7 + $0x60] sm:$0xff] }
  0x3f   :  { %216 = vmatprep.subr.mxu0 %v183_v41  ;;  %663 = vmatprep.subr.mxu1 %v183_v41  ;;  %v156_v11 = vld [vmem:[#allocation7 + $0x120] sm:$0xff]  ;;  %v133_v12 = vld [vmem:[#allocation7 + $0x68] sm:$0xff]  ;;  %v134_v14 = vld [vmem:[#allocation7 + $0x70] sm:$0xff] }
  0x40   :  { %217 = vmatpush1.msra.mxu0 %v810_v18  ;;  %679 = vmatpush1.msra.mxu1 %v810_v18  ;;  %v157_v13 = vld [vmem:[#allocation7 + $0x128] sm:$0xff]  ;;  %v158_v15 = vld [vmem:[#allocation7 + $0x130] sm:$0xff]  ;;  %v135_v16 = vld [vmem:[#allocation7 + $0x78] sm:$0xff] }
  0x41   :  { %218 = vmatprep.subr.mxu0 %v181_v42  ;;  %664 = vmatprep.subr.mxu1 %v181_v42  ;;  %v159_v17 = vld [vmem:[#allocation7 + $0x138] sm:$0xff]  ;;  %v136_v18 = vld [vmem:[#allocation7 + $0x80] sm:$0xff]  ;;  %v161_v21 = vld [vmem:[#allocation7 + $0x148] sm:$0xff] }
  0x42   :  { %219 = vmatpush1.msra.mxu0 %v813_v20  ;;  %680 = vmatpush1.msra.mxu1 %v813_v20  ;;  %v160_v19 = vld [vmem:[#allocation7 + $0x140] sm:$0xff]  ;;  %v137_v20 = vld [vmem:[#allocation7 + $0x88] sm:$0xff]  ;;  %v162_v23 = vld [vmem:[#allocation7 + $0x150] sm:$0xff] }
  0x43   :  { %220 = vmatprep.subr.mxu0 %v179_v43  ;;  %665 = vmatprep.subr.mxu1 %v179_v43  ;;  %v163_v25 = vld [vmem:[#allocation7 + $0x158] sm:$0xff]  ;;  %v140_v26 = vld [vmem:[#allocation7 + $0xa0] sm:$0xff]  ;;  %v165_v29 = vld [vmem:[#allocation7 + $0x168] sm:$0xff] }
  0x44   :  { %221 = vmatpush1.msra.mxu0 %v817_v22  ;;  %681 = vmatpush1.msra.mxu1 %v817_v22  ;;  %v138_v22 = vld [vmem:[#allocation7 + $0x90] sm:$0xff]  ;;  %v164_v27 = vld [vmem:[#allocation7 + $0x160] sm:$0xff]  ;;  %v143_v32 = vld [vmem:[#allocation7 + $0xb8] sm:$0xff] }
  0x45   :  { %222 = vmatprep.subr.mxu0 %v177_v44  ;;  %666 = vmatprep.subr.mxu1 %v177_v44  ;;  %v142_v30 = vld [vmem:[#allocation7 + $0xb0] sm:$0xff] }
  0x46   :  { %223 = vmatpush1.msra.mxu0 %v819_v24  ;;  %682 = vmatpush1.msra.mxu1 %v819_v24  ;;  %v139_v24 = vld [vmem:[#allocation7 + $0x98] sm:$0xff] }
  0x47   :  { %224 = vmatprep.subr.mxu0 %v175_v45  ;;  %667 = vmatprep.subr.mxu1 %v175_v45 }
  0x48   :  { %225 = vmatpush1.msra.mxu0 %v823_v28  ;;  %683 = vmatpush1.msra.mxu1 %v823_v28  ;;  %v141_v28 = vld [vmem:[#allocation7 + $0xa8] sm:$0xff] }
  0x49   :  { %226 = vmatprep.subr.mxu0 %v173_v46  ;;  %668 = vmatprep.subr.mxu1 %v173_v46 }
  0x4a   :  { %227 = vmatpush1.msra.mxu0 %v826_v31  ;;  %684 = vmatpush1.msra.mxu1 %v826_v31  ;;  %v166_v31 = vld [vmem:[#allocation7 + $0x170] sm:$0xff] }
  0x4b   :  { %228 = vmatprep.subr.mxu0 %v171_v47  ;;  %669 = vmatprep.subr.mxu1 %v171_v47 }
  0x4c   :  { %229 = vmatpush1.msra.mxu0 %v828_v33  ;;  %685 = vmatpush1.msra.mxu1 %v828_v33  ;;  %v167_v33 = vld [vmem:[#allocation7 + $0x178] sm:$0xff] }
  0x4d   :  { %230 = vmatprep.subr.mxu0 %v169_v48  ;;  %670 = vmatprep.subr.mxu1 %v169_v48 }
  0x4e   :  { %231 = vmatpush1.msra.mxu0 %v832_v36  ;;  %686 = vmatpush1.msra.mxu1 %v832_v36 }
  0x4f   :  { %265 = vmatmul.mubr.f32.vlgmr.msra.gmra.mxu0 %v120_v49  ;;  %409 = vmatmul.mubr.f32.vlgmr.msra.gmra.mxu1 %v144_v50 }
  0x50   :  { %270 = vmatprep.mubr.f32.mxu0 %v766_v0  ;;  %414 = vmatprep.mubr.f32.mxu1 %v766_v0 }
  0x53   :  { %271 = vmatmul.mubr.f32.gmra.mxu0 %v121_v51  ;;  %415 = vmatmul.mubr.f32.gmra.mxu1 %v145_v52 }
  0x54   :  { %276 = vmatprep.mubr.f32.mxu0 %v766_v0  ;;  %420 = vmatprep.mubr.f32.mxu1 %v766_v0 }
  0x57   :  { %277 = vmatmul.mubr.f32.gmra.mxu0 %v122_v53  ;;  %421 = vmatmul.mubr.f32.gmra.mxu1 %v146_v54 }
  0x58   :  { %282 = vmatprep.mubr.f32.mxu0 %v766_v0  ;;  %426 = vmatprep.mubr.f32.mxu1 %v766_v0 }
  0x5b   :  { %283 = vmatmul.mubr.f32.gmra.mxu0 %v123_v55  ;;  %427 = vmatmul.mubr.f32.gmra.mxu1 %v147_v56 }
  0x5c   :  { %288 = vmatprep.mubr.f32.mxu0 %v766_v0  ;;  %432 = vmatprep.mubr.f32.mxu1 %v766_v0 }
  0x5f   :  { %289 = vmatmul.mubr.f32.gmra.mxu0 %v124_v57  ;;  %433 = vmatmul.mubr.f32.gmra.mxu1 %v148_v58 }
  0x60   :  { %294 = vmatprep.mubr.f32.mxu0 %v766_v0  ;;  %438 = vmatprep.mubr.f32.mxu1 %v766_v0 }
  0x63   :  { %295 = vmatmul.mubr.f32.gmra.mxu0 %v125_v59  ;;  %439 = vmatmul.mubr.f32.gmra.mxu1 %v149_v60 }
  0x64   :  { %300 = vmatprep.mubr.f32.mxu0 %v766_v0  ;;  %444 = vmatprep.mubr.f32.mxu1 %v766_v0 }
  0x67   :  { %301 = vmatmul.mubr.f32.gmra.mxu0 %v126_v61  ;;  %445 = vmatmul.mubr.f32.gmra.mxu1 %v150_v62 }
  0x68   :  { %306 = vmatprep.mubr.f32.mxu0 %v766_v0  ;;  %450 = vmatprep.mubr.f32.mxu1 %v766_v0 }
  0x6b   :  { %307 = vmatmul.mubr.f32.gmra.mxu0 %v127_v63  ;;  %451 = vmatmul.mubr.f32.gmra.mxu1 %v151_v1 }
  0x6c   :  { %312 = vmatprep.mubr.f32.mxu0 %v766_v0  ;;  %456 = vmatprep.mubr.f32.mxu1 %v766_v0 }
  0x6f   :  { %313 = vmatmul.mubr.f32.gmra.mxu0 %v128_v2  ;;  %457 = vmatmul.mubr.f32.gmra.mxu1 %v152_v3 }
  0x70   :  { %318 = vmatprep.mubr.f32.mxu0 %v766_v0  ;;  %462 = vmatprep.mubr.f32.mxu1 %v766_v0 }
  0x73   :  { %319 = vmatmul.mubr.f32.gmra.mxu0 %v129_v4  ;;  %463 = vmatmul.mubr.f32.gmra.mxu1 %v153_v5 }
  0x74   :  { %324 = vmatprep.mubr.f32.mxu0 %v766_v0  ;;  %468 = vmatprep.mubr.f32.mxu1 %v766_v0 }
  0x77   :  { %325 = vmatmul.mubr.f32.gmra.mxu0 %v130_v6  ;;  %469 = vmatmul.mubr.f32.gmra.mxu1 %v154_v7 }
  0x78   :  { %330 = vmatprep.mubr.f32.mxu0 %v766_v0  ;;  %474 = vmatprep.mubr.f32.mxu1 %v766_v0 }
  0x7b   :  { %331 = vmatmul.mubr.f32.gmra.mxu0 %v131_v8  ;;  %475 = vmatmul.mubr.f32.gmra.mxu1 %v155_v9 }
  0x7c   :  { %336 = vmatprep.mubr.f32.mxu0 %v766_v0  ;;  %480 = vmatprep.mubr.f32.mxu1 %v766_v0 }
  0x7f   :  { %337 = vmatmul.mubr.f32.gmra.mxu0 %v132_v10  ;;  %481 = vmatmul.mubr.f32.gmra.mxu1 %v156_v11 }
  0x80   :  { %342 = vmatprep.mubr.f32.mxu0 %v766_v0  ;;  %486 = vmatprep.mubr.f32.mxu1 %v766_v0 }
  0x83   :  { %343 = vmatmul.mubr.f32.gmra.mxu0 %v133_v12  ;;  %487 = vmatmul.mubr.f32.gmra.mxu1 %v157_v13 }
  0x84   :  { %348 = vmatprep.mubr.f32.mxu0 %v766_v0  ;;  %492 = vmatprep.mubr.f32.mxu1 %v766_v0 }
  0x87   :  { %349 = vmatmul.mubr.f32.gmra.mxu0 %v134_v14  ;;  %493 = vmatmul.mubr.f32.gmra.mxu1 %v158_v15 }
  0x88   :  { %354 = vmatprep.mubr.f32.mxu0 %v766_v0  ;;  %498 = vmatprep.mubr.f32.mxu1 %v766_v0 }
  0x8b   :  { %355 = vmatmul.mubr.f32.gmra.mxu0 %v135_v16  ;;  %499 = vmatmul.mubr.f32.gmra.mxu1 %v159_v17 }
  0x8c   :  { %360 = vmatprep.mubr.f32.mxu0 %v766_v0  ;;  %504 = vmatprep.mubr.f32.mxu1 %v766_v0 }
  0x8f   :  { %361 = vmatmul.mubr.f32.gmra.mxu0 %v136_v18  ;;  %505 = vmatmul.mubr.f32.gmra.mxu1 %v160_v19 }
  0x90   :  { %366 = vmatprep.mubr.f32.mxu0 %v766_v0  ;;  %510 = vmatprep.mubr.f32.mxu1 %v766_v0 }
  0x93   :  { %367 = vmatmul.mubr.f32.gmra.mxu0 %v137_v20  ;;  %511 = vmatmul.mubr.f32.gmra.mxu1 %v161_v21 }
  0x94   :  { %372 = vmatprep.mubr.f32.mxu0 %v766_v0  ;;  %516 = vmatprep.mubr.f32.mxu1 %v766_v0 }
  0x97   :  { %373 = vmatmul.mubr.f32.gmra.mxu0 %v138_v22  ;;  %517 = vmatmul.mubr.f32.gmra.mxu1 %v162_v23 }
  0x98   :  { %378 = vmatprep.mubr.f32.mxu0 %v766_v0  ;;  %522 = vmatprep.mubr.f32.mxu1 %v766_v0 }
  0x9b   :  { %379 = vmatmul.mubr.f32.gmra.mxu0 %v139_v24  ;;  %523 = vmatmul.mubr.f32.gmra.mxu1 %v163_v25 }
  0x9c   :  { %384 = vmatprep.mubr.f32.mxu0 %v766_v0  ;;  %528 = vmatprep.mubr.f32.mxu1 %v766_v0 }
  0x9f   :  { %385 = vmatmul.mubr.f32.gmra.mxu0 %v140_v26  ;;  %529 = vmatmul.mubr.f32.gmra.mxu1 %v164_v27 }
  0xa0   :  { %390 = vmatprep.mubr.f32.mxu0 %v766_v0  ;;  %534 = vmatprep.mubr.f32.mxu1 %v766_v0 }
  0xa3   :  { %391 = vmatmul.mubr.f32.gmra.mxu0 %v141_v28  ;;  %535 = vmatmul.mubr.f32.gmra.mxu1 %v165_v29 }
  0xa4   :  { %396 = vmatprep.mubr.f32.mxu0 %v766_v0  ;;  %540 = vmatprep.mubr.f32.mxu1 %v766_v0 }
  0xa7   :  { %397 = vmatmul.mubr.f32.gmra.mxu0 %v142_v30  ;;  %541 = vmatmul.mubr.f32.gmra.mxu1 %v166_v31 }
  0xa8   :  { %402 = vmatprep.mubr.f32.mxu0 %v766_v0  ;;  %546 = vmatprep.mubr.f32.mxu1 %v766_v0 }
  0xab   :  { %403 = vmatmul.mubr.f32.gmra.mxu0 %v143_v32  ;;  %547 = vmatmul.mubr.f32.gmra.mxu1 %v167_v33 }
 0x10f   :  { %v266_v34 = vpop.f32.mrf.mxu0  ;;  %v410_v35 = vpop.f32.mrf.mxu1 }
 0x110   :  { %553 = vst [vmem:[%s1239_s3] sm:$0xff] %v266_v34  ;;  %601 = vst [vmem:[%s1239_s3 + $0x180] sm:$0xff] %v410_v35 }
 0x111   :  { %v268_v36 = vpop.f32.mrf.mxu0  ;;  %v412_v37 = vpop.f32.mrf.mxu1 }
 0x112   :  { %554 = vst.msk [vmem:[%s1239_s3 + $0x8] sm:$0xff] %vm72_vm0, %v268_v36  ;;  %602 = vst.msk [vmem:[%s1239_s3 + $0x188] sm:$0xff] %vm72_vm0, %v412_v37 }
 0x113   :  { %v272_v0 = vpop.f32.mrf.mxu0  ;;  %v416_v38 = vpop.f32.mrf.mxu1 }
 0x114   :  { %555 = vst [vmem:[%s1239_s3 + $0x10] sm:$0xff] %v272_v0  ;;  %603 = vst [vmem:[%s1239_s3 + $0x190] sm:$0xff] %v416_v38 }
 0x115   :  { %v274_v39 = vpop.f32.mrf.mxu0  ;;  %v418_v40 = vpop.f32.mrf.mxu1 }
 0x116   :  { %556 = vst.msk [vmem:[%s1239_s3 + $0x18] sm:$0xff] %vm72_vm0, %v274_v39  ;;  %604 = vst.msk [vmem:[%s1239_s3 + $0x198] sm:$0xff] %vm72_vm0, %v418_v40 }
 0x117   :  { %v278_v41 = vpop.f32.mrf.mxu0  ;;  %v422_v42 = vpop.f32.mrf.mxu1 }
 0x118   :  { %557 = vst [vmem:[%s1239_s3 + $0x20] sm:$0xff] %v278_v41  ;;  %605 = vst [vmem:[%s1239_s3 + $0x1a0] sm:$0xff] %v422_v42 }
 0x119   :  { %v280_v43 = vpop.f32.mrf.mxu0  ;;  %v424_v44 = vpop.f32.mrf.mxu1 }
 0x11a   :  { %558 = vst.msk [vmem:[%s1239_s3 + $0x28] sm:$0xff] %vm72_vm0, %v280_v43  ;;  %606 = vst.msk [vmem:[%s1239_s3 + $0x1a8] sm:$0xff] %vm72_vm0, %v424_v44 }
 0x11b   :  { %v284_v45 = vpop.f32.mrf.mxu0  ;;  %v428_v46 = vpop.f32.mrf.mxu1 }
 0x11c   :  { %559 = vst [vmem:[%s1239_s3 + $0x30] sm:$0xff] %v284_v45  ;;  %607 = vst [vmem:[%s1239_s3 + $0x1b0] sm:$0xff] %v428_v46 }
 0x11d   :  { %v286_v47 = vpop.f32.mrf.mxu0  ;;  %v430_v48 = vpop.f32.mrf.mxu1 }
 0x11e   :  { %560 = vst.msk [vmem:[%s1239_s3 + $0x38] sm:$0xff] %vm72_vm0, %v286_v47  ;;  %608 = vst.msk [vmem:[%s1239_s3 + $0x1b8] sm:$0xff] %vm72_vm0, %v430_v48 }
 0x11f   :  { %v290_v49 = vpop.f32.mrf.mxu0  ;;  %v434_v50 = vpop.f32.mrf.mxu1 }
 0x120   :  { %561 = vst [vmem:[%s1239_s3 + $0x40] sm:$0xff] %v290_v49  ;;  %609 = vst [vmem:[%s1239_s3 + $0x1c0] sm:$0xff] %v434_v50 }
 0x121   :  { %v292_v51 = vpop.f32.mrf.mxu0  ;;  %v436_v52 = vpop.f32.mrf.mxu1 }
 0x122   :  { %562 = vst.msk [vmem:[%s1239_s3 + $0x48] sm:$0xff] %vm72_vm0, %v292_v51  ;;  %610 = vst.msk [vmem:[%s1239_s3 + $0x1c8] sm:$0xff] %vm72_vm0, %v436_v52 }
 0x123   :  { %v296_v53 = vpop.f32.mrf.mxu0  ;;  %v440_v54 = vpop.f32.mrf.mxu1 }
 0x124   :  { %563 = vst [vmem:[%s1239_s3 + $0x50] sm:$0xff] %v296_v53  ;;  %611 = vst [vmem:[%s1239_s3 + $0x1d0] sm:$0xff] %v440_v54 }
 0x125   :  { %v298_v55 = vpop.f32.mrf.mxu0  ;;  %v442_v56 = vpop.f32.mrf.mxu1 }
 0x126   :  { %564 = vst.msk [vmem:[%s1239_s3 + $0x58] sm:$0xff] %vm72_vm0, %v298_v55  ;;  %612 = vst.msk [vmem:[%s1239_s3 + $0x1d8] sm:$0xff] %vm72_vm0, %v442_v56 }
 0x127   :  { %v302_v57 = vpop.f32.mrf.mxu0  ;;  %v446_v58 = vpop.f32.mrf.mxu1 }
 0x128   :  { %565 = vst [vmem:[%s1239_s3 + $0x60] sm:$0xff] %v302_v57  ;;  %613 = vst [vmem:[%s1239_s3 + $0x1e0] sm:$0xff] %v446_v58 }
 0x129   :  { %v304_v59 = vpop.f32.mrf.mxu0  ;;  %v448_v60 = vpop.f32.mrf.mxu1 }
 0x12a   :  { %566 = vst.msk [vmem:[%s1239_s3 + $0x68] sm:$0xff] %vm72_vm0, %v304_v59  ;;  %614 = vst.msk [vmem:[%s1239_s3 + $0x1e8] sm:$0xff] %vm72_vm0, %v448_v60 }
 0x12b   :  { %v308_v61 = vpop.f32.mrf.mxu0  ;;  %v452_v62 = vpop.f32.mrf.mxu1 }
 0x12c   :  { %567 = vst [vmem:[%s1239_s3 + $0x70] sm:$0xff] %v308_v61  ;;  %615 = vst [vmem:[%s1239_s3 + $0x1f0] sm:$0xff] %v452_v62 }
 0x12d   :  { %v310_v63 = vpop.f32.mrf.mxu0  ;;  %v454_v1 = vpop.f32.mrf.mxu1 }
 0x12e   :  { %568 = vst.msk [vmem:[%s1239_s3 + $0x78] sm:$0xff] %vm72_vm0, %v310_v63  ;;  %616 = vst.msk [vmem:[%s1239_s3 + $0x1f8] sm:$0xff] %vm72_vm0, %v454_v1 }
 0x12f   :  { %v314_v2 = vpop.f32.mrf.mxu0  ;;  %v458_v3 = vpop.f32.mrf.mxu1 }
 0x130   :  { %569 = vst [vmem:[%s1239_s3 + $0x80] sm:$0xff] %v314_v2  ;;  %617 = vst [vmem:[%s1239_s3 + $0x200] sm:$0xff] %v458_v3 }
 0x131   :  { %v316_v4 = vpop.f32.mrf.mxu0  ;;  %v460_v5 = vpop.f32.mrf.mxu1 }
 0x132   :  { %570 = vst.msk [vmem:[%s1239_s3 + $0x88] sm:$0xff] %vm72_vm0, %v316_v4  ;;  %618 = vst.msk [vmem:[%s1239_s3 + $0x208] sm:$0xff] %vm72_vm0, %v460_v5 }
 0x133   :  { %v320_v6 = vpop.f32.mrf.mxu0  ;;  %v464_v7 = vpop.f32.mrf.mxu1 }
 0x134   :  { %571 = vst [vmem:[%s1239_s3 + $0x90] sm:$0xff] %v320_v6  ;;  %619 = vst [vmem:[%s1239_s3 + $0x210] sm:$0xff] %v464_v7 }
 0x135   :  { %v322_v8 = vpop.f32.mrf.mxu0  ;;  %v466_v9 = vpop.f32.mrf.mxu1 }
 0x136   :  { %572 = vst.msk [vmem:[%s1239_s3 + $0x98] sm:$0xff] %vm72_vm0, %v322_v8  ;;  %620 = vst.msk [vmem:[%s1239_s3 + $0x218] sm:$0xff] %vm72_vm0, %v466_v9 }
 0x137   :  { %v326_v10 = vpop.f32.mrf.mxu0  ;;  %v470_v11 = vpop.f32.mrf.mxu1 }
 0x138   :  { %573 = vst [vmem:[%s1239_s3 + $0xa0] sm:$0xff] %v326_v10  ;;  %621 = vst [vmem:[%s1239_s3 + $0x220] sm:$0xff] %v470_v11 }
 0x139   :  { %v328_v12 = vpop.f32.mrf.mxu0  ;;  %v472_v13 = vpop.f32.mrf.mxu1 }
 0x13a   :  { %574 = vst.msk [vmem:[%s1239_s3 + $0xa8] sm:$0xff] %vm72_vm0, %v328_v12  ;;  %622 = vst.msk [vmem:[%s1239_s3 + $0x228] sm:$0xff] %vm72_vm0, %v472_v13 }
 0x13b   :  { %v332_v14 = vpop.f32.mrf.mxu0  ;;  %v476_v15 = vpop.f32.mrf.mxu1 }
 0x13c   :  { %575 = vst [vmem:[%s1239_s3 + $0xb0] sm:$0xff] %v332_v14  ;;  %623 = vst [vmem:[%s1239_s3 + $0x230] sm:$0xff] %v476_v15 }
 0x13d   :  { %v334_v16 = vpop.f32.mrf.mxu0  ;;  %v478_v17 = vpop.f32.mrf.mxu1 }
 0x13e   :  { %576 = vst.msk [vmem:[%s1239_s3 + $0xb8] sm:$0xff] %vm72_vm0, %v334_v16  ;;  %624 = vst.msk [vmem:[%s1239_s3 + $0x238] sm:$0xff] %vm72_vm0, %v478_v17 }
 0x13f   :  { %v338_v18 = vpop.f32.mrf.mxu0  ;;  %v482_v19 = vpop.f32.mrf.mxu1 }
 0x140   :  { %577 = vst [vmem:[%s1239_s3 + $0xc0] sm:$0xff] %v338_v18  ;;  %625 = vst [vmem:[%s1239_s3 + $0x240] sm:$0xff] %v482_v19 }
 0x141   :  { %v340_v20 = vpop.f32.mrf.mxu0  ;;  %v484_v21 = vpop.f32.mrf.mxu1 }
 0x142   :  { %578 = vst.msk [vmem:[%s1239_s3 + $0xc8] sm:$0xff] %vm72_vm0, %v340_v20  ;;  %626 = vst.msk [vmem:[%s1239_s3 + $0x248] sm:$0xff] %vm72_vm0, %v484_v21 }
 0x143   :  { %v344_v22 = vpop.f32.mrf.mxu0  ;;  %v488_v23 = vpop.f32.mrf.mxu1 }
 0x144   :  { %579 = vst [vmem:[%s1239_s3 + $0xd0] sm:$0xff] %v344_v22  ;;  %627 = vst [vmem:[%s1239_s3 + $0x250] sm:$0xff] %v488_v23 }
 0x145   :  { %v346_v24 = vpop.f32.mrf.mxu0  ;;  %v490_v25 = vpop.f32.mrf.mxu1 }
 0x146   :  { %580 = vst.msk [vmem:[%s1239_s3 + $0xd8] sm:$0xff] %vm72_vm0, %v346_v24  ;;  %628 = vst.msk [vmem:[%s1239_s3 + $0x258] sm:$0xff] %vm72_vm0, %v490_v25 }
 0x147   :  { %v350_v26 = vpop.f32.mrf.mxu0  ;;  %v494_v27 = vpop.f32.mrf.mxu1 }
 0x148   :  { %581 = vst [vmem:[%s1239_s3 + $0xe0] sm:$0xff] %v350_v26  ;;  %629 = vst [vmem:[%s1239_s3 + $0x260] sm:$0xff] %v494_v27 }
 0x149   :  { %v352_v28 = vpop.f32.mrf.mxu0  ;;  %v496_v29 = vpop.f32.mrf.mxu1 }
 0x14a   :  { %582 = vst.msk [vmem:[%s1239_s3 + $0xe8] sm:$0xff] %vm72_vm0, %v352_v28  ;;  %630 = vst.msk [vmem:[%s1239_s3 + $0x268] sm:$0xff] %vm72_vm0, %v496_v29 }
 0x14b   :  { %v356_v30 = vpop.f32.mrf.mxu0  ;;  %v500_v31 = vpop.f32.mrf.mxu1 }
 0x14c   :  { %583 = vst [vmem:[%s1239_s3 + $0xf0] sm:$0xff] %v356_v30  ;;  %631 = vst [vmem:[%s1239_s3 + $0x270] sm:$0xff] %v500_v31 }
 0x14d   :  { %v358_v32 = vpop.f32.mrf.mxu0  ;;  %v502_v33 = vpop.f32.mrf.mxu1 }
 0x14e   :  { %584 = vst.msk [vmem:[%s1239_s3 + $0xf8] sm:$0xff] %vm72_vm0, %v358_v32  ;;  %632 = vst.msk [vmem:[%s1239_s3 + $0x278] sm:$0xff] %vm72_vm0, %v502_v33 }
 0x14f   :  { %v362_v34 = vpop.f32.mrf.mxu0  ;;  %v506_v35 = vpop.f32.mrf.mxu1 }
 0x150   :  { %585 = vst [vmem:[%s1239_s3 + $0x100] sm:$0xff] %v362_v34  ;;  %633 = vst [vmem:[%s1239_s3 + $0x280] sm:$0xff] %v506_v35 }
 0x151   :  { %v364_v36 = vpop.f32.mrf.mxu0  ;;  %v508_v37 = vpop.f32.mrf.mxu1 }
 0x152   :  { %586 = vst.msk [vmem:[%s1239_s3 + $0x108] sm:$0xff] %vm72_vm0, %v364_v36  ;;  %634 = vst.msk [vmem:[%s1239_s3 + $0x288] sm:$0xff] %vm72_vm0, %v508_v37 }
 0x153   :  { %v368_v0 = vpop.f32.mrf.mxu0  ;;  %v512_v38 = vpop.f32.mrf.mxu1 }
 0x154   :  { %587 = vst [vmem:[%s1239_s3 + $0x110] sm:$0xff] %v368_v0  ;;  %635 = vst [vmem:[%s1239_s3 + $0x290] sm:$0xff] %v512_v38 }
 0x155   :  { %v370_v39 = vpop.f32.mrf.mxu0  ;;  %v514_v40 = vpop.f32.mrf.mxu1 }
 0x156   :  { %588 = vst.msk [vmem:[%s1239_s3 + $0x118] sm:$0xff] %vm72_vm0, %v370_v39  ;;  %636 = vst.msk [vmem:[%s1239_s3 + $0x298] sm:$0xff] %vm72_vm0, %v514_v40 }
 0x157   :  { %v374_v41 = vpop.f32.mrf.mxu0  ;;  %v518_v42 = vpop.f32.mrf.mxu1 }
 0x158   :  { %589 = vst [vmem:[%s1239_s3 + $0x120] sm:$0xff] %v374_v41  ;;  %637 = vst [vmem:[%s1239_s3 + $0x2a0] sm:$0xff] %v518_v42 }
 0x159   :  { %v376_v43 = vpop.f32.mrf.mxu0  ;;  %v520_v44 = vpop.f32.mrf.mxu1 }
 0x15a   :  { %590 = vst.msk [vmem:[%s1239_s3 + $0x128] sm:$0xff] %vm72_vm0, %v376_v43  ;;  %638 = vst.msk [vmem:[%s1239_s3 + $0x2a8] sm:$0xff] %vm72_vm0, %v520_v44 }
 0x15b   :  { %v380_v45 = vpop.f32.mrf.mxu0  ;;  %v524_v46 = vpop.f32.mrf.mxu1 }
 0x15c   :  { %591 = vst [vmem:[%s1239_s3 + $0x130] sm:$0xff] %v380_v45  ;;  %639 = vst [vmem:[%s1239_s3 + $0x2b0] sm:$0xff] %v524_v46 }
 0x15d   :  { %v382_v47 = vpop.f32.mrf.mxu0  ;;  %v526_v48 = vpop.f32.mrf.mxu1 }
 0x15e   :  { %592 = vst.msk [vmem:[%s1239_s3 + $0x138] sm:$0xff] %vm72_vm0, %v382_v47  ;;  %640 = vst.msk [vmem:[%s1239_s3 + $0x2b8] sm:$0xff] %vm72_vm0, %v526_v48 }
 0x15f   :  { %v386_v49 = vpop.f32.mrf.mxu0  ;;  %v530_v50 = vpop.f32.mrf.mxu1 }
 0x160   :  { %593 = vst [vmem:[%s1239_s3 + $0x140] sm:$0xff] %v386_v49  ;;  %641 = vst [vmem:[%s1239_s3 + $0x2c0] sm:$0xff] %v530_v50 }
 0x161   :  { %v388_v51 = vpop.f32.mrf.mxu0  ;;  %v532_v52 = vpop.f32.mrf.mxu1 }
 0x162   :  { %594 = vst.msk [vmem:[%s1239_s3 + $0x148] sm:$0xff] %vm72_vm0, %v388_v51  ;;  %642 = vst.msk [vmem:[%s1239_s3 + $0x2c8] sm:$0xff] %vm72_vm0, %v532_v52 }
 0x163   :  { %v392_v53 = vpop.f32.mrf.mxu0  ;;  %v536_v54 = vpop.f32.mrf.mxu1 }
 0x164   :  { %595 = vst [vmem:[%s1239_s3 + $0x150] sm:$0xff] %v392_v53  ;;  %643 = vst [vmem:[%s1239_s3 + $0x2d0] sm:$0xff] %v536_v54 }
 0x165   :  { %v394_v55 = vpop.f32.mrf.mxu0  ;;  %v538_v56 = vpop.f32.mrf.mxu1 }
 0x166   :  { %596 = vst.msk [vmem:[%s1239_s3 + $0x158] sm:$0xff] %vm72_vm0, %v394_v55  ;;  %644 = vst.msk [vmem:[%s1239_s3 + $0x2d8] sm:$0xff] %vm72_vm0, %v538_v56 }
 0x167   :  { %v398_v57 = vpop.f32.mrf.mxu0  ;;  %v542_v58 = vpop.f32.mrf.mxu1 }
 0x168   :  { %597 = vst [vmem:[%s1239_s3 + $0x160] sm:$0xff] %v398_v57  ;;  %645 = vst [vmem:[%s1239_s3 + $0x2e0] sm:$0xff] %v542_v58 }
 0x169   :  { %v400_v59 = vpop.f32.mrf.mxu0  ;;  %v544_v60 = vpop.f32.mrf.mxu1 }
 0x16a   :  { %598 = vst.msk [vmem:[%s1239_s3 + $0x168] sm:$0xff] %vm72_vm0, %v400_v59  ;;  %646 = vst.msk [vmem:[%s1239_s3 + $0x2e8] sm:$0xff] %vm72_vm0, %v544_v60 }
 0x16b   :  { %v404_v61 = vpop.f32.mrf.mxu0  ;;  %v548_v62 = vpop.f32.mrf.mxu1 }
 0x16c   :  { %599 = vst [vmem:[%s1239_s3 + $0x170] sm:$0xff] %v404_v61  ;;  %647 = vst [vmem:[%s1239_s3 + $0x2f0] sm:$0xff] %v548_v62 }
 0x16d   :  { %v406_v63 = vpop.f32.mrf.mxu0  ;;  %v550_v1 = vpop.f32.mrf.mxu1 }
 0x16e   :  { %600 = vst.msk [vmem:[%s1239_s3 + $0x178] sm:$0xff] %vm72_vm0, %v406_v63  ;;  %648 = vst.msk [vmem:[%s1239_s3 + $0x2f8] sm:$0xff] %vm72_vm0, %v550_v1 }
 0x16f   :  { %653 = vsyncpa [#allocation4], 1 }
 0x170   :  { %654 = vsyncpa [#allocation6], 1 }

</bundles_post_ra>
